<compile_context>
chip_gen: v7x
topology: tpu7x:2x2x1
jax: 0.10.0
libtpu: 0.0.40
codegen_flags: <defaults>
</compile_context>

<pallas_src>
import functools

import jax
import jax.numpy as jnp
from jax.experimental import pallas as pl
from jax.experimental.pallas import tpu as pltpu

_BN_EPS = 1e-5


def _round_up(x, m):
    return (x + m - 1) // m * m


# ---------------- pass 1: h = x @ W1^T  + per-tile BN statistics ----------------
def _pass1_kernel(x_ref, w1t_ref, h_ref, psum_ref, pssq_ref):
    # MXU matmul, f32 accumulation.
    h = jnp.dot(x_ref[...], w1t_ref[...], preferred_element_type=jnp.float32)
    h_ref[...] = h.astype(h_ref.dtype)
    # Per-tile feature-axis statistics (padded batch rows are zero -> no effect).
    psum_ref[...] = jnp.sum(h, axis=0, keepdims=True)[None]        # (1, 1, pdp)
    pssq_ref[...] = jnp.sum(h * h, axis=0, keepdims=True)[None]    # (1, 1, pdp)


# ---------------- pass 2: BN(scale/shift) + ReLU + @ W2^T + b2 -------------------
def _pass2_kernel(h_ref, scale_ref, shift_ref, w2t_ref, b2_ref, o_ref):
    # BN + ReLU in f32 on the VPU.
    a = jnp.maximum(h_ref[...].astype(jnp.float32) * scale_ref[...] + shift_ref[...], 0.0)
    out = jnp.dot(a.astype(w2t_ref.dtype), w2t_ref[...],
                  preferred_element_type=jnp.float32) + b2_ref[...]
    o_ref[...] = out.astype(o_ref.dtype)


@functools.partial(jax.jit, static_argnames=("matmul_dtype", "row_tile"))
def predictor_forward(x, w1, gamma, beta, w2, b2, *,
                      matmul_dtype=jnp.bfloat16, row_tile=256):
    """x: (N, dim); w1: (pred_dim, dim); w2: (dim, pred_dim); b2: (dim,)."""
    N, dim = x.shape
    pred_dim = w1.shape[0]
    f32 = jnp.float32
    mm = matmul_dtype

    # Lane-dense padded sizes and batch tiling.
    dimp = _round_up(dim, 128)
    pdp = _round_up(pred_dim, 128)
    tn = min(row_tile, _round_up(N, 8))          # rows per grid step (mult of 8)
    np_ = _round_up(N, tn)
    n_tiles = np_ // tn

    # Parameter / input glue (fused under jit): pad, pre-transpose weights to
    # (in, out), cast MXU operands; BN/bias params stay f32.
    xp = jnp.zeros((np_, dimp), mm).at[:N, :dim].set(x.astype(mm))
    w1t = jnp.zeros((dimp, pdp), mm).at[:dim, :pred_dim].set(jnp.asarray(w1, mm).T)
    w2t = jnp.zeros((pdp, dimp), mm).at[:pred_dim, :dim].set(jnp.asarray(w2, mm).T)
    gp = jnp.zeros((1, pdp), f32).at[0, :pred_dim].set(jnp.asarray(gamma, f32))
    bp = jnp.zeros((1, pdp), f32).at[0, :pred_dim].set(jnp.asarray(beta, f32))
    b2p = jnp.zeros((1, dimp), f32).at[0, :dim].set(jnp.asarray(b2, f32))

    isz = jnp.dtype(mm).itemsize
    cparams = pltpu.CompilerParams(
        dimension_semantics=("parallel",),       # megacore-shard batch tiles (v7x)
        vmem_limit_bytes=48 * 1024 * 1024,       # explicit headroom over 32 MiB default
    )

    # ---------------- pass 1 ----------------
    cost1 = pl.CostEstimate(
        flops=2 * np_ * dimp * pdp,
        transcendentals=0,
        bytes_accessed=(np_ * dimp + dimp * pdp + np_ * pdp) * isz
        + 2 * n_tiles * pdp * 4,
    )
    h, psum, pssq = pl.pallas_call(
        _pass1_kernel,
        grid=(n_tiles,),
        in_specs=[
            pl.BlockSpec((tn, dimp), lambda i: (i, 0)),        # x tile (streamed)
            pl.BlockSpec((dimp, pdp), lambda i: (0, 0)),       # W1^T resident in VMEM
        ],
        out_specs=[
            pl.BlockSpec((tn, pdp), lambda i: (i, 0)),         # h tile
            pl.BlockSpec((1, 1, pdp), lambda i: (i, 0, 0)),    # per-tile sum
            pl.BlockSpec((1, 1, pdp), lambda i: (i, 0, 0)),    # per-tile sum of squares
        ],
        out_shape=[
            jax.ShapeDtypeStruct((np_, pdp), mm),
            jax.ShapeDtypeStruct((n_tiles, 1, pdp), f32),
            jax.ShapeDtypeStruct((n_tiles, 1, pdp), f32),
        ],
        compiler_params=cparams,
        cost_estimate=cost1,
    )(xp, w1t)

    # ------- tiny full-batch BN statistics glue (O(pred_dim), fused by XLA) -------
    total_sum = jnp.sum(psum, axis=0)                            # (1, pdp)
    total_ssq = jnp.sum(pssq, axis=0)                            # (1, pdp)
    mean = total_sum / N                                         # true batch size
    var = jnp.maximum(total_ssq / N - mean * mean, 0.0)          # biased variance
    inv_std = jax.lax.rsqrt(var + _BN_EPS)
    scale = gp * inv_std                                         # fused BN affine
    shift = bp - mean * scale

    # ---------------- pass 2 ----------------
    cost2 = pl.CostEstimate(
        flops=2 * np_ * pdp * dimp + 3 * np_ * pdp,
        transcendentals=0,
        bytes_accessed=(np_ * pdp + pdp * dimp) * isz
        + (np_ * dimp + 2 * pdp + dimp) * 4,
    )
    out = pl.pallas_call(
        _pass2_kernel,
        grid=(n_tiles,),
        in_specs=[
            pl.BlockSpec((tn, pdp), lambda i: (i, 0)),         # h tile (streamed)
            pl.BlockSpec((1, pdp), lambda i: (0, 0)),          # BN scale (resident)
            pl.BlockSpec((1, pdp), lambda i: (0, 0)),          # BN shift (resident)
            pl.BlockSpec((pdp, dimp), lambda i: (0, 0)),       # W2^T resident in VMEM
            pl.BlockSpec((1, dimp), lambda i: (0, 0)),         # b2 (resident)
        ],
        out_specs=pl.BlockSpec((tn, dimp), lambda i: (i, 0)),
        out_shape=jax.ShapeDtypeStruct((np_, dimp), f32),
        compiler_params=cparams,
        cost_estimate=cost2,
    )(h, scale, shift, w2t, b2p)

    return out[:N, :dim]


def _ref_forward(x, w1, gamma, beta, w2, b2):
    """Pure-JAX f32 reference matching PyTorch train-mode semantics."""
    h = x @ w1.T
    mean = jnp.mean(h, axis=0, keepdims=True)
    var = jnp.mean((h - mean) ** 2, axis=0, keepdims=True)
    h = (h - mean) / jnp.sqrt(var + _BN_EPS) * gamma + beta
    h = jnp.maximum(h, 0.0)
    return h @ w2.T + b2


if __name__ == "__main__":
    # Small shapes consistent with the module: x is (batch, dim).
    N, dim, pred_dim = 8, 32, 8

    key = jax.random.PRNGKey(0)
    kx, kw1, kw2, kb2 = jax.random.split(key, 4)

    x = jax.random.normal(kx, (N, dim), dtype=jnp.float32)

    # PyTorch Linear default init: U(-1/sqrt(fan_in), 1/sqrt(fan_in)).
    bound1 = 1.0 / float(dim) ** 0.5
    w1 = jax.random.uniform(kw1, (pred_dim, dim), jnp.float32, -bound1, bound1)
    bound2 = 1.0 / float(pred_dim) ** 0.5
    w2 = jax.random.uniform(kw2, (dim, pred_dim), jnp.float32, -bound2, bound2)
    b2 = jax.random.uniform(kb2, (dim,), jnp.float32, -bound2, bound2)
    gamma = jnp.ones((pred_dim,), jnp.float32)   # BatchNorm1d weight
    beta = jnp.zeros((pred_dim,), jnp.float32)   # BatchNorm1d bias

    ref = _ref_forward(x, w1, gamma, beta, w2, b2)

    # f32 MXU path: tight check against PyTorch-semantics reference.
    out_f32 = jax.block_until_ready(
        predictor_forward(x, w1, gamma, beta, w2, b2, matmul_dtype=jnp.float32))
    assert out_f32.shape == (N, dim)
    assert jnp.allclose(out_f32, ref, atol=1e-4, rtol=1e-4)

    # bf16 MXU path (production default): looser tolerance for bf16 operands.
    out_bf16 = jax.block_until_ready(
        predictor_forward(x, w1, gamma, beta, w2, b2, matmul_dtype=jnp.bfloat16))
    assert out_bf16.shape == (N, dim)
    assert jnp.allclose(out_bf16, ref, atol=5e-2, rtol=5e-2)

    print("KERNEL_OK")
</pallas_src>

<mosaic_0001>
module attributes {stable_mosaic.version = 11 : i64} {
  func.func @_pass2_kernel(%arg0: i32, %arg1: memref<8x128xf32, #tpu.memory_space<vmem>>, %arg2: memref<1x128xf32, #tpu.memory_space<vmem>>, %arg3: memref<1x128xf32, #tpu.memory_space<vmem>>, %arg4: memref<128x128xf32, #tpu.memory_space<vmem>>, %arg5: memref<1x128xf32, #tpu.memory_space<vmem>>, %arg6: memref<8x128xf32, #tpu.memory_space<vmem>>) attributes {dimension_semantics = [#tpu.dimension_semantics<parallel>], iteration_bounds = array<i64: 1>, scalar_prefetch = 0 : i64, scratch_operands = 0 : i64, tpu.core_type = #tpu.core_type<tc>, window_params = [{transform_indices = @transform_0, window_bounds = array<i64: 8, 128>}, {pipeline_mode = #tpu.pipeline_mode<synchronous>, transform_indices = @transform_1, window_bounds = array<i64: 1, 128>}, {pipeline_mode = #tpu.pipeline_mode<synchronous>, transform_indices = @transform_2, window_bounds = array<i64: 1, 128>}, {pipeline_mode = #tpu.pipeline_mode<synchronous>, transform_indices = @transform_3, window_bounds = array<i64: 128, 128>}, {pipeline_mode = #tpu.pipeline_mode<synchronous>, transform_indices = @transform_4, window_bounds = array<i64: 1, 128>}, {transform_indices = @transform_5, window_bounds = array<i64: 8, 128>}]} {
    %c0 = arith.constant 0 : index
    %c0_0 = arith.constant 0 : index
    %0 = vector.load %arg1[%c0, %c0_0] : memref<8x128xf32, #tpu.memory_space<vmem>>, vector<8x128xf32>
    %c0_1 = arith.constant 0 : index
    %c0_2 = arith.constant 0 : index
    %1 = vector.load %arg2[%c0_1, %c0_2] : memref<1x128xf32, #tpu.memory_space<vmem>>, vector<1x128xf32>
    %2 = vector.broadcast %1 : vector<1x128xf32> to vector<8x128xf32>
    %3 = arith.mulf %0, %2 : vector<8x128xf32>
    %c0_3 = arith.constant 0 : index
    %c0_4 = arith.constant 0 : index
    %4 = vector.load %arg3[%c0_3, %c0_4] : memref<1x128xf32, #tpu.memory_space<vmem>>, vector<1x128xf32>
    %5 = vector.broadcast %4 : vector<1x128xf32> to vector<8x128xf32>
    %6 = arith.addf %3, %5 : vector<8x128xf32>
    %cst = arith.constant 0.000000e+00 : f32
    %7 = vector.broadcast %cst : f32 to vector<8x128xf32>
    %8 = arith.maximumf %6, %7 : vector<8x128xf32>
    %c0_5 = arith.constant 0 : index
    %c0_6 = arith.constant 0 : index
    %9 = vector.load %arg4[%c0_5, %c0_6] : memref<128x128xf32, #tpu.memory_space<vmem>>, vector<128x128xf32>
    %cst_7 = arith.constant dense<0.000000e+00> : vector<8x128xf32>
    %10 = tpu.matmul %8, %9, %cst_7 {dimension_numbers = #tpu.dot_dimension_numbers<[1], [0], [0], [1], [0, 0, 1, 1], [], []>} : vector<8x128xf32>, vector<128x128xf32>, vector<8x128xf32> -> vector<8x128xf32>
    %c0_8 = arith.constant 0 : index
    %c0_9 = arith.constant 0 : index
    %11 = vector.load %arg5[%c0_8, %c0_9] : memref<1x128xf32, #tpu.memory_space<vmem>>, vector<1x128xf32>
    %12 = vector.broadcast %11 : vector<1x128xf32> to vector<8x128xf32>
    %13 = arith.addf %10, %12 : vector<8x128xf32>
    %c0_10 = arith.constant 0 : index
    %c0_11 = arith.constant 0 : index
    %14 = vector.load %arg6[%c0_10, %c0_11] : memref<8x128xf32, #tpu.memory_space<vmem>>, vector<8x128xf32>
    tpu.vector_store %arg6[%c0_10, %c0_11], %13 {strides = array<i32>} : memref<8x128xf32, #tpu.memory_space<vmem>>, vector<8x128xf32>,
    return
  }
  func.func @transform_0(%arg0: i32) -> (i32, i32) {
    %c0_i32 = arith.constant 0 : i32
    %c0_i32_0 = arith.constant 0 : i32
    return %arg0, %c0_i32 : i32, i32
  }
  func.func @transform_1(%arg0: i32) -> (i32, i32) {
    %c0_i32 = arith.constant 0 : i32
    %c0_i32_0 = arith.constant 0 : i32
    %c0_i32_1 = arith.constant 0 : i32
    return %c0_i32, %c0_i32_0 : i32, i32
  }
  func.func @transform_2(%arg0: i32) -> (i32, i32) {
    %c0_i32 = arith.constant 0 : i32
    %c0_i32_0 = arith.constant 0 : i32
    %c0_i32_1 = arith.constant 0 : i32
    return %c0_i32, %c0_i32_0 : i32, i32
  }
  func.func @transform_3(%arg0: i32) -> (i32, i32) {
    %c0_i32 = arith.constant 0 : i32
    %c0_i32_0 = arith.constant 0 : i32
    %c0_i32_1 = arith.constant 0 : i32
    return %c0_i32, %c0_i32_0 : i32, i32
  }
  func.func @transform_4(%arg0: i32) -> (i32, i32) {
    %c0_i32 = arith.constant 0 : i32
    %c0_i32_0 = arith.constant 0 : i32
    %c0_i32_1 = arith.constant 0 : i32
    return %c0_i32, %c0_i32_0 : i32, i32
  }
  func.func @transform_5(%arg0: i32) -> (i32, i32) {
    %c0_i32 = arith.constant 0 : i32
    %c0_i32_0 = arith.constant 0 : i32
    return %arg0, %c0_i32 : i32, i32
  }
}

module attributes {stable_mosaic.version = 11 : i64} {
  func.func @_pass1_kernel(%arg0: i32, %arg1: memref<8x128xf32, #tpu.memory_space<vmem>>, %arg2: memref<128x128xf32, #tpu.memory_space<vmem>>, %arg3: memref<8x128xf32, #tpu.memory_space<vmem>>, %arg4: memref<1x1x128xf32, #tpu.memory_space<vmem>>, %arg5: memref<1x1x128xf32, #tpu.memory_space<vmem>>) attributes {dimension_semantics = [#tpu.dimension_semantics<parallel>], iteration_bounds = array<i64: 1>, scalar_prefetch = 0 : i64, scratch_operands = 0 : i64, tpu.core_type = #tpu.core_type<tc>, window_params = [{transform_indices = @transform_0, window_bounds = array<i64: 8, 128>}, {pipeline_mode = #tpu.pipeline_mode<synchronous>, transform_indices = @transform_1, window_bounds = array<i64: 128, 128>}, {transform_indices = @transform_2, window_bounds = array<i64: 8, 128>}, {transform_indices = @transform_3, window_bounds = array<i64: 1, 1, 128>}, {transform_indices = @transform_4, window_bounds = array<i64: 1, 1, 128>}]} {
    %c0 = arith.constant 0 : index
    %c0_0 = arith.constant 0 : index
    %0 = vector.load %arg1[%c0, %c0_0] : memref<8x128xf32, #tpu.memory_space<vmem>>, vector<8x128xf32>
    %c0_1 = arith.constant 0 : index
    %c0_2 = arith.constant 0 : index
    %1 = vector.load %arg2[%c0_1, %c0_2] : memref<128x128xf32, #tpu.memory_space<vmem>>, vector<128x128xf32>
    %cst = arith.constant dense<0.000000e+00> : vector<8x128xf32>
    %2 = tpu.matmul %0, %1, %cst {dimension_numbers = #tpu.dot_dimension_numbers<[1], [0], [0], [1], [0, 0, 1, 1], [], []>} : vector<8x128xf32>, vector<128x128xf32>, vector<8x128xf32> -> vector<8x128xf32>
    %c0_3 = arith.constant 0 : index
    %c0_4 = arith.constant 0 : index
    %3 = vector.load %arg3[%c0_3, %c0_4] : memref<8x128xf32, #tpu.memory_space<vmem>>, vector<8x128xf32>
    tpu.vector_store %arg3[%c0_3, %c0_4], %2 {strides = array<i32>} : memref<8x128xf32, #tpu.memory_space<vmem>>, vector<8x128xf32>,
    %cst_5 = arith.constant dense<0.000000e+00> : vector<128xf32>
    %4 = vector.multi_reduction <add>, %2, %cst_5 [0] : vector<8x128xf32> to vector<128xf32>
    %5 = vector.shape_cast %4 : vector<128xf32> to vector<1x128xf32>
    %6 = vector.shape_cast %5 : vector<1x128xf32> to vector<1x1x128xf32>
    %c0_6 = arith.constant 0 : index
    %c0_7 = arith.constant 0 : index
    %c0_8 = arith.constant 0 : index
    %7 = vector.load %arg4[%c0_6, %c0_7, %c0_8] : memref<1x1x128xf32, #tpu.memory_space<vmem>>, vector<1x1x128xf32>
    tpu.vector_store %arg4[%c0_6, %c0_7, %c0_8], %6 {strides = array<i32>} : memref<1x1x128xf32, #tpu.memory_space<vmem>>, vector<1x1x128xf32>,
    %8 = arith.mulf %2, %2 : vector<8x128xf32>
    %cst_9 = arith.constant dense<0.000000e+00> : vector<128xf32>
    %9 = vector.multi_reduction <add>, %8, %cst_9 [0] : vector<8x128xf32> to vector<128xf32>
    %10 = vector.shape_cast %9 : vector<128xf32> to vector<1x128xf32>
    %11 = vector.shape_cast %10 : vector<1x128xf32> to vector<1x1x128xf32>
    %c0_10 = arith.constant 0 : index
    %c0_11 = arith.constant 0 : index
    %c0_12 = arith.constant 0 : index
    %12 = vector.load %arg5[%c0_10, %c0_11, %c0_12] : memref<1x1x128xf32, #tpu.memory_space<vmem>>, vector<1x1x128xf32>
    tpu.vector_store %arg5[%c0_10, %c0_11, %c0_12], %11 {strides = array<i32>} : memref<1x1x128xf32, #tpu.memory_space<vmem>>, vector<1x1x128xf32>,
    return
  }
  func.func @transform_0(%arg0: i32) -> (i32, i32) {
    %c0_i32 = arith.constant 0 : i32
    %c0_i32_0 = arith.constant 0 : i32
    return %arg0, %c0_i32 : i32, i32
  }
  func.func @transform_1(%arg0: i32) -> (i32, i32) {
    %c0_i32 = arith.constant 0 : i32
    %c0_i32_0 = arith.constant 0 : i32
    %c0_i32_1 = arith.constant 0 : i32
    return %c0_i32, %c0_i32_0 : i32, i32
  }
  func.func @transform_2(%arg0: i32) -> (i32, i32) {
    %c0_i32 = arith.constant 0 : i32
    %c0_i32_0 = arith.constant 0 : i32
    return %arg0, %c0_i32 : i32, i32
  }
  func.func @transform_3(%arg0: i32) -> (i32, i32, i32) {
    %c0_i32 = arith.constant 0 : i32
    %c0_i32_0 = arith.constant 0 : i32
    %c0_i32_1 = arith.constant 0 : i32
    return %arg0, %c0_i32, %c0_i32_0 : i32, i32, i32
  }
  func.func @transform_4(%arg0: i32) -> (i32, i32, i32) {
    %c0_i32 = arith.constant 0 : i32
    %c0_i32_0 = arith.constant 0 : i32
    %c0_i32_1 = arith.constant 0 : i32
    return %arg0, %c0_i32, %c0_i32_0 : i32, i32, i32
  }
}

</mosaic_0001>

<bundles_post_ra>
// kernel: predictor_forward.2
= control target key start
LH: loop header
LB: loop body
LE: loop exit
PB: predicated region body
PF: predicated region fallthrough
CT: control target
= control target key end

     0   :  { %v208_v0 = vmov 0.0|0.0   ;;  %vm209_vm0 = vmmov 0   ;;  %v210_v4 = vmov 0.0   ;;  %s296_s1 = inlined_call_operand.vmem [shape: f32[128,128], index: 1, kind: input, shape index: {}]   ;;  %s297_s0 = inlined_call_operand.vmem [shape: f32[8,128], index: 0, kind: input, shape index: {}]   ;;  %s298_s2 = inlined_call_operand.vmem [shape: f32[8,128], index: 2, kind: output, shape index: {0}]   ;;  %s299_s3 = inlined_call_operand.vmem [shape: f32[1,1,128], index: 3, kind: output, shape index: {1}]   ;;  %s300_s4 = inlined_call_operand.vmem [shape: f32[1,1,128], index: 4, kind: output, shape index: {2}]  }
   0x1   :  { %181 = vmatprep.subr.bf16.mxu0 %v208_v0  ;;  %v15_v1 = vld [vmem:[%s296_s1] sm:$0xff]  ;;  %v16_v2 = vld [vmem:[%s296_s1 + $0x8] sm:$0xff]  ;;  %v17_v3 = vld [vmem:[%s296_s1 + $0x10] sm:$0xff]  ;;  %178 = vmatprep.mubr.msk.f32.mxu0 %vm209_vm0, %v210_v4 }
   0x2   :  { %v182_v5 = vpack.c.bf16 %v16_v2, %v15_v1  ;;  %v18_v6 = vld [vmem:[%s296_s1 + $0x18] sm:$0xff]  ;;  %v19_v8 = vld [vmem:[%s296_s1 + $0x20] sm:$0xff]  ;;  %v20_v9 = vld [vmem:[%s296_s1 + $0x28] sm:$0xff] }
   0x3   :  { %v185_v7 = vpack.c.bf16 %v18_v6, %v17_v3  ;;  %v188_v10 = vpack.c.bf16 %v20_v9, %v19_v8  ;;  %v21_v11 = vld [vmem:[%s296_s1 + $0x30] sm:$0xff]  ;;  %v22_v12 = vld [vmem:[%s296_s1 + $0x38] sm:$0xff]  ;;  %v23_v14 = vld [vmem:[%s296_s1 + $0x40] sm:$0xff] }
   0x4   :  { %183 = vmatpush3.bf16.msra.mxu0 %v182_v5  ;;  %v191_v13 = vpack.c.bf16 %v22_v12, %v21_v11  ;;  %v24_v15 = vld [vmem:[%s296_s1 + $0x48] sm:$0xff]  ;;  %v25_v17 = vld [vmem:[%s296_s1 + $0x50] sm:$0xff]  ;;  %v26_v18 = vld [vmem:[%s296_s1 + $0x58] sm:$0xff] }
   0x5   :  { %184 = vmatprep.subr.bf16.mxu0 %v208_v0  ;;  %v194_v16 = vpack.c.bf16 %v24_v15, %v23_v14  ;;  %v197_v19 = vpack.c.bf16 %v26_v18, %v25_v17  ;;  %v27_v20 = vld [vmem:[%s296_s1 + $0x60] sm:$0xff]  ;;  %v28_v21 = vld [vmem:[%s296_s1 + $0x68] sm:$0xff]  ;;  %v29_v23 = vld [vmem:[%s296_s1 + $0x70] sm:$0xff] }
   0x6   :  { %v200_v22 = vpack.c.bf16 %v28_v21, %v27_v20  ;;  %v30_v24 = vld [vmem:[%s296_s1 + $0x78] sm:$0xff]  ;;  %v14_v26 = vld [vmem:[%s297_s0] sm:$0xff] }
   0x7   :  { %v203_v25 = vpack.c.bf16 %v30_v24, %v29_v23 }
   0x8   :  { %186 = vmatpush3.bf16.msra.mxu0 %v185_v7 }
   0x9   :  { %187 = vmatprep.subr.bf16.mxu0 %v208_v0 }
   0xc   :  { %189 = vmatpush3.bf16.msra.mxu0 %v188_v10 }
   0xd   :  { %190 = vmatprep.subr.bf16.mxu0 %v208_v0 }
  0x10   :  { %192 = vmatpush3.bf16.msra.mxu0 %v191_v13 }
  0x11   :  { %193 = vmatprep.subr.bf16.mxu0 %v208_v0 }
  0x14   :  { %195 = vmatpush3.bf16.msra.mxu0 %v194_v16 }
  0x15   :  { %196 = vmatprep.subr.bf16.mxu0 %v208_v0 }
  0x18   :  { %198 = vmatpush3.bf16.msra.mxu0 %v197_v19 }
  0x19   :  { %199 = vmatprep.subr.bf16.mxu0 %v208_v0 }
  0x1c   :  { %201 = vmatpush3.bf16.msra.mxu0 %v200_v22 }
  0x1d   :  { %202 = vmatprep.subr.bf16.mxu0 %v208_v0 }
  0x20   :  { %204 = vmatpush3.bf16.msra.mxu0 %v203_v25 }
  0x23   :  { %179 = vmatmul.mubr.f32.vlgmr.msra.gmra.mrb[0].mxu0 %v14_v26 }
  0xf6   :  { %v97_v27 = vpop.f32.mrb[0].mxu0 }
  0xf7   :  { %101 = vst [vmem:[%s298_s2] sm:$0xff] %v97_v27  ;;  %v102_v28 = vrot.slane %v97_v27, 4  ;;  %v109_v29 = vmul.f32 %v97_v27, %v97_v27  ;;  %v180_v30 = vpop.f32.mrb[1].mxu0 }
  0xf9   :  { %v103_v31 = vadd.f32 %v102_v28, %v97_v27  ;;  %v110_v32 = vrot.slane %v109_v29, 4 }
  0xfb   :  { %v104_v33 = vrot.slane %v103_v31, 2  ;;  %v111_v34 = vadd.f32 %v110_v32, %v109_v29 }
  0xfd   :  { %v105_v35 = vadd.f32 %v104_v33, %v103_v31  ;;  %v112_v36 = vrot.slane %v111_v34, 2 }
  0xff   :  { %v106_v37 = vrot.slane %v105_v35, 1  ;;  %v113_v38 = vadd.f32 %v112_v36, %v111_v34 }
 0x101   :  { %v107_v39 = vadd.f32 %v106_v37, %v105_v35  ;;  %v114_v40 = vrot.slane %v113_v38, 1 }
 0x103   :  { %108 = vst [vmem:[%s299_s3] sm:$0x1] %v107_v39  ;;  %v115_v41 = vadd.f32 %v114_v40, %v113_v38 }
 0x105   :  { %116 = vst [vmem:[%s300_s4] sm:$0x1] %v115_v41 }

// kernel: predictor_forward.3
= control target key start
LH: loop header
LB: loop body
LE: loop exit
PB: predicated region body
PF: predicated region fallthrough
CT: control target
= control target key end

     0   :  { %v254_v3 = vmov 0.0|0.0   ;;  %vm255_vm0 = vmmov 0   ;;  %v256_v6 = vmov 0.0   ;;  %s360_s0 = inlined_call_operand.vmem [shape: f32[8,128], index: 0, kind: input, shape index: {}]   ;;  %s361_s1 = inlined_call_operand.vmem [shape: f32[1,128], index: 1, kind: input, shape index: {}]   ;;  %s362_s2 = inlined_call_operand.vmem [shape: f32[1,128], index: 2, kind: input, shape index: {}]   ;;  %s363_s3 = inlined_call_operand.vmem [shape: f32[128,128], index: 3, kind: input, shape index: {}]   ;;  %s364_s4 = inlined_call_operand.vmem [shape: f32[1,128], index: 4, kind: input, shape index: {}]   ;;  %s365_s5 = inlined_call_operand.hbm [shape: f32[8,128], index: 5, kind: output, shape index: {}]  }
   0x1   :  { %v39_v0 = vld [vmem:[%s363_s3] sm:$0xff]  ;;  %v40_v1 = vld [vmem:[%s363_s3 + $0x8] sm:$0xff]  ;;  %v41_v2 = vld [vmem:[%s363_s3 + $0x10] sm:$0xff]  ;;  %202 = vmatprep.subr.bf16.mxu0 %v254_v3  ;;  %199 = vmatprep.mubr.msk.f32.mxu0 %vm255_vm0, %v256_v6 }
   0x2   :  { %v203_v4 = vpack.c.bf16 %v40_v1, %v39_v0  ;;  %v42_v5 = vld [vmem:[%s363_s3 + $0x18] sm:$0xff]  ;;  %v43_v8 = vld [vmem:[%s363_s3 + $0x20] sm:$0xff]  ;;  %v44_v9 = vld [vmem:[%s363_s3 + $0x28] sm:$0xff] }
   0x3   :  { %v206_v7 = vpack.c.bf16 %v42_v5, %v41_v2 }
   0x4   :  { %204 = vmatpush3.bf16.msra.mxu0 %v203_v4 }
   0x5   :  { %205 = vmatprep.subr.bf16.mxu0 %v254_v3 }
   0x6   :  { %10 = vsyncpa [#allocation3], 0  ;;  %v209_v10 = vpack.c.bf16 %v44_v9, %v43_v8  ;;  %v45_v11 = vld [vmem:[%s363_s3 + $0x30] sm:$0xff]  ;;  %v46_v12 = vld [vmem:[%s363_s3 + $0x38] sm:$0xff] }
   0x7   :  { %v212_v13 = vpack.c.bf16 %v46_v12, %v45_v11  ;;  %v47_v14 = vld [vmem:[%s363_s3 + $0x40] sm:$0xff]  ;;  %v48_v15 = vld [vmem:[%s363_s3 + $0x48] sm:$0xff]  ;;  %v49_v17 = vld [vmem:[%s363_s3 + $0x50] sm:$0xff] }
   0x8   :  { %207 = vmatpush3.bf16.msra.mxu0 %v206_v7  ;;  %v215_v16 = vpack.c.bf16 %v48_v15, %v47_v14  ;;  %v50_v18 = vld [vmem:[%s363_s3 + $0x58] sm:$0xff]  ;;  %v21_v20 = vld [vmem:[%s360_s0] sm:$0xff]  ;;  %v52_v23 = vld [vmem:[%s363_s3 + $0x68] sm:$0xff] }
   0x9   :  { %208 = vmatprep.subr.bf16.mxu0 %v254_v3  ;;  %v218_v19 = vpack.c.bf16 %v50_v18, %v49_v17  ;;  %v147_v21 = vld [vmem:[%s361_s1] ss:$0 sm:$0xff]  ;;  %v53_v27 = vld [vmem:[%s363_s3 + $0x70] sm:$0xff]  ;;  %v54_v28 = vld [vmem:[%s363_s3 + $0x78] sm:$0xff] }
   0xa   :  { %v51_v22 = vld [vmem:[%s363_s3 + $0x60] sm:$0xff]  ;;  %v29_v24 = vmul.f32 %v147_v21, %v21_v20  ;;  %v224_v30 = vpack.c.bf16 %v54_v28, %v53_v27 }
   0xb   :  { %v221_v25 = vpack.c.bf16 %v52_v23, %v51_v22  ;;  %v148_v26 = vld [vmem:[%s362_s2] ss:$0 sm:$0xff]  ;;  %s257_s2 = smov [#allocation2]  }
   0xc   :  { %210 = vmatpush3.bf16.msra.mxu0 %v209_v10  ;;  %v37_v29 = vadd.f32 %v148_v26, %v29_v24  ;;  %v149_v32 = vld [vmem:[%s364_s4] ss:$0 sm:$0xff]  ;;  %s139_s6 = sshll.u32 %s257_s2, 4  ;;  %s140_s6 = int_to_ptr.vmem [resolvable:$true] %s139_s6 }
   0xd   :  { %211 = vmatprep.subr.bf16.mxu0 %v254_v3  ;;  %s230_s7 = scalar_lea.vmem %s140_s6, 128  ;;  %p235_p1 = scmp.lt.s32.totalorder %s140_s6, %s140_s6 }
   0xe   :  { %v38_v31 = vmax.f32 %v37_v29, 0.0  ;;  %p231_p0 = scmp.ne.s32.totalorder %s140_s6, %s230_s7  ;;  %p236_p2 = scmp.lt.s32.totalorder %s230_s7, %s230_s7 }
  0x10   :  { %213 = vmatpush3.bf16.msra.mxu0 %v212_v13  ;;  %p237_p3 = por %p236_p2, %p235_p1 }
  0x11   :  { %214 = vmatprep.subr.bf16.mxu0 %v254_v3 }
  0x12   :  { %p238_p4 = pnand %p237_p3, %p231_p0 }
  0x14   :  { %216 = vmatpush3.bf16.msra.mxu0 %v215_v16 }
  0x15   :  { %217 = vmatprep.subr.bf16.mxu0 %v254_v3 }
  0x18   :  { %219 = vmatpush3.bf16.msra.mxu0 %v218_v19 }
  0x19   :  { %220 = vmatprep.subr.bf16.mxu0 %v254_v3 }
  0x1c   :  { %222 = vmatpush3.bf16.msra.mxu0 %v221_v25 }
  0x1d   :  { %223 = vmatprep.subr.bf16.mxu0 %v254_v3 }
  0x20   :  { %225 = vmatpush3.bf16.msra.mxu0 %v224_v30 }
  0x23   :  { %200 = vmatmul.mubr.f32.vlgmr.msra.gmra.mrb[0].mxu0 %v38_v31 }
  0xf6   :  { %v128_v33 = vpop.f32.mrb[0].mxu0 }
  0xf7   :  { %v129_v34 = vadd.f32 %v149_v32, %v128_v33  ;;  %v201_v35 = vpop.f32.mrb[1].mxu0 }
  0xf9   :  { %132 = vst [vmem:[#allocation2] sm:$0xff] %v129_v34 }
  0xfa   :  { %241 = shalt.err (!%p238_p4)
}
  0xfb   :  { %s242_s9 = scalar_lea.hbm %s365_s5, 128 }
  0xfc   :  { %p243_p5 = scmp.ne.s32.totalorder %s365_s5, %s242_s9  ;;  %p246_p6 = scmp.lt.u32.totalorder %s242_s9, %s365_s5 }
  0xfe   :  { %p248_p7 = pnand %p246_p6, %p243_p5 }
 0x100   :  { %251 = shalt.err (!%p248_p7)
}
 0x101   :  { %142 = dma.vmem_to_hbm [thread:$0]  %s140_s6, 128, %s365_s5, [#allocation3]  }
 0x102   :  { %252 = dma.done.wait [#allocation3], 128  }
 0x103   :  { %253 = vsyncadd [#allocation3], 4294967168 }
 0x104   :  { %146 = vsyncpa [#allocation3], 1 }

</bundles_post_ra>
